<compile_context>
chip_gen: v7x
topology: tpu7x:2x2x1
jax: 0.10.0
libtpu: 0.0.40
codegen_flags: <defaults>
</compile_context>

<pallas_src>
import functools

import jax
import jax.numpy as jnp
from jax import lax
from jax.experimental import pallas as pl
from jax.experimental.pallas import tpu as pltpu


def _round_up(x, m):
    return (x + m - 1) // m * m


def _pick_block(total, unit, cap):
    """Largest multiple of `unit` that divides `total` (a multiple of unit), <= cap."""
    k = total // unit
    for m in range(max(1, min(k, cap // unit)), 0, -1):
        if k % m == 0:
            return m * unit
    return unit


# ----------------------------------------------------------------------------
# Kernel 1: time averaging (reduction over T), sublane/lane-dense blocks
# ----------------------------------------------------------------------------
def _time_avg_kernel(y_ref, o_ref):
    # y_ref: (RB, T, LB) block, o_ref: (RB, LB) block
    o_ref[...] = jnp.mean(y_ref[...].astype(jnp.float32), axis=1).astype(o_ref.dtype)


def _masked_time_avg_kernel(y_ref, m_ref, o_ref):
    y = y_ref[...].astype(jnp.float32)
    m = m_ref[...].astype(jnp.float32)
    num = jnp.sum(y * m, axis=1)
    den = jnp.sum(m, axis=1) + 1e-8
    o_ref[...] = (num / den).astype(o_ref.dtype)


def time_average(y, mask=None):
    """Average over the time dim. y: (B, C, T, H, W) -> (B, C, H, W)."""
    B, C, T, H, W = y.shape
    R, L = B * C, H * W
    out_dtype = y.dtype
    y2 = y.reshape(R, T, L)                         # free reshape, no HBM copy

    itemsize = jnp.dtype(y.dtype).itemsize
    row_blk = 8 if R % 8 == 0 else R                # sublane-dense rows (or full extent)
    budget = 4 * 1024 * 1024                        # ~4 MiB/block -> long DMA runs
    if L % 128 == 0:
        lane_cap = max(128, budget // (row_blk * T * itemsize))
        lane_blk = _pick_block(L, 128, lane_cap)
    else:
        lane_blk = L                                # full-extent lanes, no HBM padding
    grid = (R // row_blk, L // lane_blk)

    cp = pltpu.CompilerParams(
        dimension_semantics=("parallel", "parallel"),
        vmem_limit_bytes=32 * 1024 * 1024)          # v5e scoped default is only 16 MiB
    y_spec = pl.BlockSpec((row_blk, T, lane_blk), lambda i, j: (i, 0, j))
    out_spec = pl.BlockSpec((row_blk, lane_blk), lambda i, j: (i, j))

    if mask is None:
        out = pl.pallas_call(
            _time_avg_kernel,
            out_shape=jax.ShapeDtypeStruct((R, L), out_dtype),
            grid=grid, in_specs=[y_spec], out_specs=out_spec,
            compiler_params=cp,
        )(y2)
    else:
        if mask.shape != y.shape:
            mask = jnp.broadcast_to(mask, y.shape)
        m2 = mask.astype(jnp.float32).reshape(R, T, L)   # keep mask precision
        out = pl.pallas_call(
            _masked_time_avg_kernel,
            out_shape=jax.ShapeDtypeStruct((R, L), out_dtype),
            grid=grid, in_specs=[y_spec, y_spec], out_specs=out_spec,
            compiler_params=cp,
        )(y2, m2)

    return out.reshape(B, C, H, W)


# ----------------------------------------------------------------------------
# Kernel 2: fused backbone  Conv3x3(pad=1) -> ReLU -> Conv3x3(pad=1)
# One grid step per batch element.  Both convs are single GEMMs (folded taps).
# ----------------------------------------------------------------------------
def _fused_backbone_kernel(xc_ref, w1_ref, b1_ref, w2_ref, b2_ref, o_ref, hpad_ref,
                           *, H, W, HW, N1p, P, compute_dtype):
    f32 = jnp.float32

    # --- conv1: ONE GEMM over all 9 taps (K = 9*C), bias + ReLU ---------------
    hid = jnp.dot(xc_ref[0], w1_ref[...], preferred_element_type=f32)
    hid = jnp.maximum(hid + b1_ref[...], 0.0)        # (HW, N1p); padded chans stay 0

    # --- stage hidden in a flat row-padded scratch (aligned stores only) ------
    # rows [0,P) and [P+HW, 2P+HW) are the vertical halo (zeroed each step,
    # tiny); the interior store lands at the 8-aligned offset P.
    hpad_ref[0:P, :] = jnp.zeros((P, N1p), f32)
    hpad_ref[P + HW:2 * P + HW, :] = jnp.zeros((P, N1p), f32)
    hpad_ref[P:P + HW, :] = hid

    # --- conv2: build lane-aligned im2col (HW, 9*N1p) and run ONE GEMM --------
    # Tap (dy,dx) of pixel r=i*W+j is hidden row r+(dy-1)*W+(dx-1); vertical
    # out-of-bounds hits the zero halo rows, horizontal wrap is masked out.
    j_col = lax.broadcasted_iota(jnp.int32, (HW, 1), 0) % W
    left_edge = j_col == 0
    right_edge = j_col == W - 1
    patches = []
    for dy in range(3):
        for dx in range(3):
            start = P + (dy - 1) * W + (dx - 1)
            p = hpad_ref[start:start + HW, :]
            if dx == 0:
                p = jnp.where(left_edge, 0.0, p)
            elif dx == 2:
                p = jnp.where(right_edge, 0.0, p)
            patches.append(p)
    im2col2 = jnp.concatenate(patches, axis=-1).astype(compute_dtype)   # (HW, 9*N1p)
    out = jnp.dot(im2col2, w2_ref[...], preferred_element_type=f32) + b2_ref[...]
    o_ref[0] = out.astype(o_ref.dtype)               # lane-dense Cp-wide unmasked store


def conv_backbone(x_static, params, compute_dtype=jnp.float32):
    """x_static: (B, C, H, W) -> (B, Cout, H, W). Fully fused in one pallas_call."""
    B, C, H, W = x_static.shape
    w1, b1, w2, b2 = params["w1"], params["b1"], params["w2"], params["b2"]
    N1, Cout = w1.shape[0], w2.shape[0]
    N1p, Cp = _round_up(N1, 128), _round_up(Cout, 128)
    HW = H * W

    # conv1 im2col built host-side: tiny tensor (9*C columns), keeps the
    # in-kernel conv1 a single K=9*C GEMM without lane-unaligned concat.
    xh = jnp.pad(x_static.transpose(0, 2, 3, 1), ((0, 0), (1, 1), (1, 1), (0, 0)))
    cols = [xh[:, dy:dy + H, dx:dx + W, :] for dy in range(3) for dx in range(3)]
    xcol = jnp.concatenate(cols, axis=-1).reshape(B, HW, 9 * C).astype(compute_dtype)

    # weight packing: K index = tap*Cin + cin (conv1) / tap*N1p + n (conv2).
    w1t = jnp.pad(w1.transpose(2, 3, 1, 0).reshape(9 * C, N1),
                  ((0, 0), (0, N1p - N1))).astype(compute_dtype)
    w2t = jnp.pad(w2.transpose(2, 3, 1, 0).reshape(9, N1, Cout),
                  ((0, 0), (0, N1p - N1), (0, Cp - Cout))
                  ).reshape(9 * N1p, Cp).astype(compute_dtype)
    b1p = jnp.pad(b1, (0, N1p - N1)).reshape(1, N1p).astype(jnp.float32)
    b2p = jnp.pad(b2, (0, Cp - Cout)).reshape(1, Cp).astype(jnp.float32)

    P = _round_up(W + 1, 8)   # 8-aligned interior row offset in the flat scratch

    kernel = functools.partial(_fused_backbone_kernel, H=H, W=W, HW=HW,
                               N1p=N1p, P=P, compute_dtype=compute_dtype)
    out = pl.pallas_call(
        kernel,
        out_shape=jax.ShapeDtypeStruct((B, HW, Cp), jnp.float32),
        grid=(B,),
        in_specs=[
            pl.BlockSpec((1, HW, 9 * C), lambda b: (b, 0, 0)),
            pl.BlockSpec((9 * C, N1p), lambda b: (0, 0)),
            pl.BlockSpec((1, N1p), lambda b: (0, 0)),
            pl.BlockSpec((9 * N1p, Cp), lambda b: (0, 0)),
            pl.BlockSpec((1, Cp), lambda b: (0, 0)),
        ],
        out_specs=pl.BlockSpec((1, HW, Cp), lambda b: (b, 0, 0)),
        scratch_shapes=[pltpu.VMEM((2 * P + HW, N1p), jnp.float32)],
        compiler_params=pltpu.CompilerParams(dimension_semantics=("parallel",)),
    )(xcol, w1t, b1p, w2t, b2p)

    # slice off padded channels (tiny) and go back to NCHW.
    return out[:, :, :Cout].reshape(B, H, W, Cout).transpose(0, 3, 1, 2)


# ----------------------------------------------------------------------------
# TimeAveragingNet forward (with the deterministic static conv backbone)
# ----------------------------------------------------------------------------
def time_averaging_net_forward(y, params, physics=None, compute_dtype=jnp.float32):
    mask = getattr(physics, "mask", None)
    x_static = time_average(y, mask)                   # (B, C, H, W)
    # backbone_net(x_static, static_physics): this backbone ignores physics.
    return conv_backbone(x_static, params, compute_dtype=compute_dtype)


def init_backbone_params(key, c_in, hidden):
    k1, k2, k3, k4 = jax.random.split(key, 4)
    return {
        "w1": jax.random.normal(k1, (hidden, c_in, 3, 3), jnp.float32) * 0.1,
        "b1": jax.random.normal(k2, (hidden,), jnp.float32) * 0.01,
        "w2": jax.random.normal(k3, (c_in, hidden, 3, 3), jnp.float32) * 0.1,
        "b2": jax.random.normal(k4, (c_in,), jnp.float32) * 0.01,
    }


# ----------------------------------------------------------------------------
# Pure-JAX reference (silent correctness check)
# ----------------------------------------------------------------------------
def reference_forward(y, params):
    x = jnp.mean(y, axis=2)
    dn = ("NCHW", "OIHW", "NCHW")
    h = lax.conv_general_dilated(x, params["w1"], (1, 1), "SAME",
                                 dimension_numbers=dn)
    h = jnp.maximum(h + params["b1"][None, :, None, None], 0.0)
    o = lax.conv_general_dilated(h, params["w2"], (1, 1), "SAME",
                                 dimension_numbers=dn)
    return o + params["b2"][None, :, None, None]


if __name__ == "__main__":
    B, C, T, H, W = 2, 4, 8, 16, 16
    hidden = 32

    key = jax.random.PRNGKey(0)
    k_y, k_p = jax.random.split(key)
    y = jax.random.normal(k_y, (B, C, T, H, W), jnp.float32)
    params = init_backbone_params(k_p, C, hidden)

    # f32 path (exact check vs. reference)
    out = jax.block_until_ready(time_averaging_net_forward(y, params, physics=None))
    assert out.shape == (B, C, H, W), out.shape
    ref = jax.block_until_ready(reference_forward(y, params))
    assert jnp.allclose(out, ref, atol=1e-4, rtol=1e-4), (
        float(jnp.max(jnp.abs(out - ref))))

    # bf16 MXU fast path (f32 accumulation), looser tolerance
    out_bf16 = jax.block_until_ready(
        time_averaging_net_forward(y, params, physics=None,
                                   compute_dtype=jnp.bfloat16))
    assert jnp.allclose(out_bf16, ref, atol=3e-2, rtol=3e-2), (
        float(jnp.max(jnp.abs(out_bf16 - ref))))

    # masked time-average path (used when physics.mask exists)
    mask = (jax.random.uniform(jax.random.PRNGKey(1), (B, C, T, H, W)) > 0.5
            ).astype(jnp.float32)
    xa = jax.block_until_ready(time_average(y, mask))
    ref_m = (y * mask).sum(axis=2) / (mask.sum(axis=2) + 1e-8)
    assert jnp.allclose(xa, ref_m, atol=1e-5, rtol=1e-5), (
        float(jnp.max(jnp.abs(xa - ref_m))))

    print("KERNEL_OK")
</pallas_src>

<mosaic_0001>
module attributes {stable_mosaic.version = 11 : i64} {
  func.func @_time_avg_kernel(%arg0: i32, %arg1: i32, %arg2: memref<8x8x256xf32, #tpu.memory_space<vmem>>, %arg3: memref<8x256xf32, #tpu.memory_space<vmem>>) attributes {dimension_semantics = [#tpu.dimension_semantics<parallel>, #tpu.dimension_semantics<parallel>], iteration_bounds = array<i64: 1, 1>, scalar_prefetch = 0 : i64, scratch_operands = 0 : i64, tpu.core_type = #tpu.core_type<tc>, window_params = [{transform_indices = @transform_0, window_bounds = array<i64: 8, 8, 256>}, {transform_indices = @transform_1, window_bounds = array<i64: 8, 256>}]} {
    %c0 = arith.constant 0 : index
    %c0_0 = arith.constant 0 : index
    %c0_1 = arith.constant 0 : index
    %0 = vector.load %arg2[%c0, %c0_0, %c0_1] : memref<8x8x256xf32, #tpu.memory_space<vmem>>, vector<8x8x256xf32>
    %cst = arith.constant dense<0.000000e+00> : vector<8x256xf32>
    %1 = vector.multi_reduction <add>, %0, %cst [1] : vector<8x8x256xf32> to vector<8x256xf32>
    %cst_2 = arith.constant 8.000000e+00 : f32
    %2 = vector.broadcast %cst_2 : f32 to vector<8x256xf32>
    %3 = arith.divf %1, %2 : vector<8x256xf32>
    %c0_3 = arith.constant 0 : index
    %c0_4 = arith.constant 0 : index
    %4 = vector.load %arg3[%c0_3, %c0_4] : memref<8x256xf32, #tpu.memory_space<vmem>>, vector<8x256xf32>
    tpu.vector_store %arg3[%c0_3, %c0_4], %3 {strides = array<i32>} : memref<8x256xf32, #tpu.memory_space<vmem>>, vector<8x256xf32>,
    return
  }
  func.func @transform_0(%arg0: i32, %arg1: i32) -> (i32, i32, i32) {
    %c0_i32 = arith.constant 0 : i32
    %c0_i32_0 = arith.constant 0 : i32
    return %arg0, %c0_i32, %arg1 : i32, i32, i32
  }
  func.func @transform_1(%arg0: i32, %arg1: i32) -> (i32, i32) {
    %c0_i32 = arith.constant 0 : i32
    return %arg0, %arg1 : i32, i32
  }
}

</mosaic_0001>

<bundles_post_ra>
// kernel: tpu_custom_call.1
= control target key start
LH: loop header
LB: loop body
LE: loop exit
PB: predicated region body
PF: predicated region fallthrough
CT: control target
= control target key end

     0   :  { %6 = vsyncpa [#allocation3], 0  ;;  %s312_s0 = inlined_call_operand.hbm [shape: f32[8,8,256], index: 0, kind: input, shape index: {}]   ;;  %s313_s1 = inlined_call_operand.hbm [shape: f32[8,256], index: 1, kind: output, shape index: {}]  }
   0x1   :  { %7 = vsyncpa [#allocation4], 0  ;;  %s260_s6 = smov [#allocation2]   ;;  %s212_s10 = scalar_lea.hbm %s312_s0, 2048 }
   0x2   :  { %s13_s7 = sshll.u32 %s260_s6, 4  ;;  %p213_p0 = scmp.ne.s32.totalorder %s312_s0, %s212_s10  ;;  %s14_s7 = int_to_ptr.vmem [resolvable:$true] %s13_s7 }
   0x3   :  { %p216_p1 = scmp.lt.u32.totalorder %s212_s10, %s312_s0 }
   0x5   :  { %p218_p2 = pnand %p216_p1, %p213_p0 }
   0x7   :  { %221 = shalt.err (!%p218_p2)
}
   0x8   :  { %s222_s15 = scalar_lea.vmem %s14_s7, 2048  ;;  %p227_p4 = scmp.lt.s32.totalorder %s14_s7, %s14_s7 }
   0x9   :  { %p223_p3 = scmp.ne.s32.totalorder %s14_s7, %s222_s15  ;;  %p228_p5 = scmp.lt.s32.totalorder %s222_s15, %s222_s15 }
   0xb   :  { %p229_p6 = por %p228_p5, %p227_p4 }
   0xd   :  { %p230_p7 = pnand %p229_p6, %p223_p3 }
   0xf   :  { %233 = shalt.err (!%p230_p7)
}
  0x10   :  { %s261_s16 = smov 256   ;;  %s262_s17 = smov 16  }
  0x11   :  { %19 = dma.hbm_to_vmem [thread:$0]  %s312_s0, 2048, %s14_s7, [#allocation3], %s261_s16, %s261_s16, %s262_s17  }
  0x12   :  { %256 = dma.done.wait [#allocation3], 2048  }
  0x13   :  { %257 = vsyncadd [#allocation3], 4294965248  ;;  %v23_v0 = vld [vmem:[#allocation2] sm:$0xff]  ;;  %v25_v1 = vld [vmem:[#allocation2 + $0x10] sm:$0xff]  ;;  %vm168_vm0 = vcmask 1041409   ;;  %vm170_vm1 = vcmask 1042434  }
  0x14   :  { %v27_v2 = vld [vmem:[#allocation2 + $0x20] sm:$0xff]  ;;  %v29_v3 = vld [vmem:[#allocation2 + $0x30] sm:$0xff]  ;;  %v39_v6 = vrot.slane %v23_v0, 4  ;;  %v51_v7 = vrot.slane %v25_v1, 4  ;;  %vm172_vm2 = vcmask 1043459   ;;  %vm174_vm3 = vcmask 1044484  }
  0x15   :  { %v31_v4 = vld [vmem:[#allocation2 + $0x40] sm:$0xff]  ;;  %v33_v5 = vld [vmem:[#allocation2 + $0x50] sm:$0xff]  ;;  %v63_v8 = vrot.slane %v27_v2, 4  ;;  %v75_v11 = vrot.slane %v29_v3, 4  ;;  %vm176_vm4 = vcmask 1045509   ;;  %vm178_vm5 = vcmask 1046534  }
  0x16   :  { %v35_v9 = vld [vmem:[#allocation2 + $0x60] sm:$0xff]  ;;  %v37_v10 = vld [vmem:[#allocation2 + $0x70] sm:$0xff]  ;;  %v87_v12 = vrot.slane %v31_v4, 4  ;;  %v99_v13 = vrot.slane %v33_v5, 4  ;;  %v40_v14 = vadd.f32 %v39_v6, %v23_v0  ;;  %v52_v15 = vadd.f32 %v51_v7, %v25_v1  ;;  %v24_v54 = vld [vmem:[#allocation2 + $0x8] sm:$0xff]  ;;  %s263_s0 = smov [#allocation5]  }
  0x17   :  { %v64_v16 = vadd.f32 %v63_v8, %v27_v2  ;;  %v111_v17 = vrot.slane %v35_v9, 4  ;;  %v76_v18 = vadd.f32 %v75_v11, %v29_v3  ;;  %v123_v21 = vrot.slane %v37_v10, 4  ;;  %v26_v55 = vld [vmem:[#allocation2 + $0x18] sm:$0xff]  ;;  %v28_v60 = vld [vmem:[#allocation2 + $0x28] sm:$0xff]  ;;  %s199_s20 = sshll.u32 %s263_s0, 4  ;;  %s200_s20 = int_to_ptr.vmem [resolvable:$true] %s199_s20 }
  0x18   :  { %v88_v19 = vadd.f32 %v87_v12, %v31_v4  ;;  %v100_v20 = vadd.f32 %v99_v13, %v33_v5  ;;  %v41_v22 = vrot.slane %v40_v14, 2  ;;  %v53_v23 = vrot.slane %v52_v15, 2  ;;  %v30_v61 = vld [vmem:[#allocation2 + $0x38] sm:$0xff]  ;;  %v32_v2 = vld [vmem:[#allocation2 + $0x48] sm:$0xff]  ;;  %s234_s21 = scalar_lea.vmem %s200_s20, 256  ;;  %p239_p9 = scmp.lt.s32.totalorder %s200_s20, %s200_s20 }
  0x19   :  { %v65_v24 = vrot.slane %v64_v16, 2  ;;  %v112_v25 = vadd.f32 %v111_v17, %v35_v9  ;;  %v77_v26 = vrot.slane %v76_v18, 2  ;;  %v124_v29 = vadd.f32 %v123_v21, %v37_v10  ;;  %v34_v5 = vld [vmem:[#allocation2 + $0x58] sm:$0xff]  ;;  %v36_v21 = vld [vmem:[#allocation2 + $0x68] sm:$0xff]  ;;  %p235_p8 = scmp.ne.s32.totalorder %s200_s20, %s234_s21  ;;  %p240_p10 = scmp.lt.s32.totalorder %s234_s21, %s234_s21 }
  0x1a   :  { %v89_v27 = vrot.slane %v88_v19, 2  ;;  %v101_v28 = vrot.slane %v100_v20, 2  ;;  %v42_v30 = vadd.f32 %v41_v22, %v40_v14  ;;  %v54_v31 = vadd.f32 %v53_v23, %v52_v15 }
  0x1b   :  { %v66_v32 = vadd.f32 %v65_v24, %v64_v16  ;;  %v113_v33 = vrot.slane %v112_v25, 2  ;;  %v78_v34 = vadd.f32 %v77_v26, %v76_v18  ;;  %v125_v37 = vrot.slane %v124_v29, 2  ;;  %v38_v26 = vld [vmem:[#allocation2 + $0x78] sm:$0xff]  ;;  %p241_p11 = por %p240_p10, %p239_p9 }
  0x1c   :  { %v90_v35 = vadd.f32 %v89_v27, %v88_v19  ;;  %v102_v36 = vadd.f32 %v101_v28, %v100_v20  ;;  %v43_v38 = vrot.slane %v42_v30, 1  ;;  %v55_v39 = vrot.slane %v54_v31, 1 }
  0x1d   :  { %v67_v40 = vrot.slane %v66_v32, 1  ;;  %v114_v41 = vadd.f32 %v113_v33, %v112_v25  ;;  %v79_v42 = vrot.slane %v78_v34, 1  ;;  %v126_v45 = vadd.f32 %v125_v37, %v124_v29  ;;  %p242_p12 = pnand %p241_p11, %p235_p8 }
  0x1e   :  { %v91_v43 = vrot.slane %v90_v35, 1  ;;  %v103_v44 = vrot.slane %v102_v36, 1  ;;  %vm180_vm6 = vcmask 1047559   ;;  %v44_v46 = vadd.f32 %v43_v38, %v42_v30 }
  0x1f   :  { %v56_v47 = vadd.f32 %v55_v39, %v54_v31  ;;  %v68_v48 = vadd.f32 %v67_v40, %v66_v32  ;;  %v115_v49 = vrot.slane %v114_v41, 1  ;;  %v80_v50 = vadd.f32 %v79_v42, %v78_v34 }
  0x20   :  { %v92_v51 = vadd.f32 %v91_v43, %v90_v35  ;;  %v104_v52 = vadd.f32 %v103_v44, %v102_v36  ;;  %v127_v53 = vrot.slane %v126_v45, 1  ;;  %v136_v57 = vmul.f32 0.125, %v44_v46 }
  0x21   :  { %v116_v56 = vadd.f32 %v115_v49, %v114_v41  ;;  %v138_v58 = vmul.f32 0.125, %v56_v47  ;;  %v140_v59 = vmul.f32 0.125, %v68_v48  ;;  %v142_v63 = vmul.f32 0.125, %v80_v50 }
  0x22   :  { %v128_v62 = vadd.f32 %v127_v53, %v126_v45  ;;  %v144_v0 = vmul.f32 0.125, %v92_v51  ;;  %v146_v1 = vmul.f32 0.125, %v104_v52  ;;  %v45_v6 = vrot.slane %v24_v54, 4 }
  0x23   :  { %v148_v3 = vmul.f32 0.125, %v116_v56  ;;  %v169_v4 = vsel %vm168_vm0, %v138_v58, %v136_v57  ;;  %v57_v7 = vrot.slane %v26_v55, 4  ;;  %v69_v10 = vrot.slane %v28_v60, 4 }
  0x24   :  { %v150_v8 = vmul.f32 0.125, %v128_v62  ;;  %v171_v9 = vsel %vm170_vm1, %v140_v59, %v169_v4  ;;  %v81_v11 = vrot.slane %v30_v61, 4  ;;  %v46_v13 = vadd.f32 %v45_v6, %v24_v54 }
  0x25   :  { %v173_v12 = vsel %vm172_vm2, %v142_v63, %v171_v9  ;;  %v58_v14 = vadd.f32 %v57_v7, %v26_v55  ;;  %v93_v15 = vrot.slane %v32_v2, 4  ;;  %v70_v17 = vadd.f32 %v69_v10, %v28_v60 }
  0x26   :  { %v175_v16 = vsel %vm174_vm3, %v144_v0, %v173_v12  ;;  %v82_v18 = vadd.f32 %v81_v11, %v30_v61  ;;  %v105_v19 = vrot.slane %v34_v5, 4  ;;  %v47_v22 = vrot.slane %v46_v13, 2 }
  0x27   :  { %v177_v20 = vsel %vm176_vm4, %v146_v1, %v175_v16  ;;  %v59_v23 = vrot.slane %v58_v14, 2  ;;  %v94_v24 = vadd.f32 %v93_v15, %v32_v2  ;;  %v71_v27 = vrot.slane %v70_v17, 2 }
  0x28   :  { %v179_v25 = vsel %vm178_vm5, %v148_v3, %v177_v20  ;;  %v83_v28 = vrot.slane %v82_v18, 2  ;;  %v106_v29 = vadd.f32 %v105_v19, %v34_v5  ;;  %v48_v31 = vadd.f32 %v47_v22, %v46_v13 }
  0x29   :  { %v181_v30 = vsel %vm180_vm6, %v150_v8, %v179_v25  ;;  %v60_v32 = vadd.f32 %v59_v23, %v58_v14  ;;  %v95_v33 = vrot.slane %v94_v24, 2  ;;  %v72_v34 = vadd.f32 %v71_v27, %v70_v17 }
  0x2a   :  { %191 = vst [vmem:[#allocation5] sm:$0xff] %v181_v30  ;;  %v84_v35 = vadd.f32 %v83_v28, %v82_v18  ;;  %v107_v36 = vrot.slane %v106_v29, 2  ;;  %v117_v37 = vrot.slane %v36_v21, 4  ;;  %v49_v38 = vrot.slane %v48_v31, 1 }
  0x2b   :  { %v61_v39 = vrot.slane %v60_v32, 1  ;;  %v96_v40 = vadd.f32 %v95_v33, %v94_v24  ;;  %v129_v41 = vrot.slane %v38_v26, 4  ;;  %v73_v42 = vrot.slane %v72_v34, 1 }
  0x2c   :  { %v85_v43 = vrot.slane %v84_v35, 1  ;;  %v108_v44 = vadd.f32 %v107_v36, %v106_v29  ;;  %v118_v45 = vadd.f32 %v117_v37, %v36_v21  ;;  %v50_v46 = vadd.f32 %v49_v38, %v48_v31 }
  0x2d   :  { %v62_v47 = vadd.f32 %v61_v39, %v60_v32  ;;  %v97_v48 = vrot.slane %v96_v40, 1  ;;  %v130_v49 = vadd.f32 %v129_v41, %v38_v26  ;;  %v74_v50 = vadd.f32 %v73_v42, %v72_v34 }
  0x2e   :  { %v86_v51 = vadd.f32 %v85_v43, %v84_v35  ;;  %v109_v52 = vrot.slane %v108_v44, 1  ;;  %v119_v53 = vrot.slane %v118_v45, 2  ;;  %v137_v56 = vmul.f32 0.125, %v50_v46 }
  0x2f   :  { %v98_v54 = vadd.f32 %v97_v48, %v96_v40  ;;  %v131_v55 = vrot.slane %v130_v49, 2  ;;  %v139_v57 = vmul.f32 0.125, %v62_v47  ;;  %v141_v60 = vmul.f32 0.125, %v74_v50 }
  0x30   :  { %v110_v58 = vadd.f32 %v109_v52, %v108_v44  ;;  %v120_v59 = vadd.f32 %v119_v53, %v118_v45  ;;  %v143_v61 = vmul.f32 0.125, %v86_v51 }
  0x31   :  { %v132_v62 = vadd.f32 %v131_v55, %v130_v49  ;;  %v145_v63 = vmul.f32 0.125, %v98_v54  ;;  %v182_v0 = vsel %vm168_vm0, %v139_v57, %v137_v56 }
  0x32   :  { %v121_v1 = vrot.slane %v120_v59, 1  ;;  %v147_v2 = vmul.f32 0.125, %v110_v58  ;;  %v183_v3 = vsel %vm170_vm1, %v141_v60, %v182_v0 }
  0x33   :  { %v133_v4 = vrot.slane %v132_v62, 1  ;;  %v184_v5 = vsel %vm172_vm2, %v143_v61, %v183_v3 }
  0x34   :  { %v122_v6 = vadd.f32 %v121_v1, %v120_v59  ;;  %v185_v7 = vsel %vm174_vm3, %v145_v63, %v184_v5 }
  0x35   :  { %v134_v8 = vadd.f32 %v133_v4, %v132_v62  ;;  %v186_v9 = vsel %vm176_vm4, %v147_v2, %v185_v7 }
  0x36   :  { %v149_v10 = vmul.f32 0.125, %v122_v6 }
  0x37   :  { %v151_v11 = vmul.f32 0.125, %v134_v8 }
  0x38   :  { %v187_v12 = vsel %vm178_vm5, %v149_v10, %v186_v9 }
  0x39   :  { %v188_v13 = vsel %vm180_vm6, %v151_v11, %v187_v12 }
  0x3a   :  { %192 = vst [vmem:[#allocation5 + $0x8] sm:$0xff] %v188_v13 }
  0x3b   :  { %245 = shalt.err (!%p242_p12)
}
  0x3c   :  { %s246_s24 = scalar_lea.hbm %s313_s1, 256 }
  0x3d   :  { %p247_p13 = scmp.ne.s32.totalorder %s313_s1, %s246_s24  ;;  %p250_p0 = scmp.lt.u32.totalorder %s246_s24, %s313_s1 }
  0x3f   :  { %p252_p1 = pnand %p250_p0, %p247_p13 }
  0x41   :  { %255 = shalt.err (!%p252_p1)
}
  0x42   :  { %202 = dma.vmem_to_hbm [thread:$0]  %s200_s20, 256, %s313_s1, [#allocation4]  }
  0x43   :  { %258 = dma.done.wait [#allocation4], 256  }
  0x44   :  { %259 = vsyncadd [#allocation4], 4294967040 }
  0x45   :  { %206 = vsyncpa [#allocation3], 1 }
  0x46   :  { %207 = vsyncpa [#allocation4], 1 }

</bundles_post_ra>
